<compile_context>
chip_gen: v6e
topology: v6e:2x2x1
jax: 0.10.0
libtpu: 0.0.40
codegen_flags: <defaults>
</compile_context>

<pallas_src>
import jax
import jax.numpy as jnp
from jax import lax
from jax.experimental import pallas as pl
from jax.experimental.pallas import tpu as pltpu

_EPS = 1e-5


def _batchnorm_train(h, gamma, beta, eps=_EPS):
    """Training-mode BatchNorm1d over axis 0 (biased variance), 2 full-width passes."""
    mu = jnp.mean(h, axis=0, keepdims=True)          # (1, H)
    ex2 = jnp.mean(h * h, axis=0, keepdims=True)     # full-width pass 1 (+ reduce)
    var = ex2 - mu * mu                              # (1, H) only
    scale = gamma * lax.rsqrt(var + eps)             # (1, H) only
    shift = beta - mu * scale                        # (1, H) only
    return h * scale + shift                         # full-width pass 2 (FMA-like)


def classifier_kernel(x_ref, w1_ref, w2_ref, w3_ref, vec_ref, out_ref):
    # vec_ref packs five (1,128) f32 row-vectors into one (8,128) buffer:
    #   row 0: g1, row 1: be1, row 2: g2, row 3: be2,
    #   row 4: b3 (lane-padded; pad lanes = -1e30 so they vanish in the softmax)
    g1 = vec_ref[0:1, :]
    be1 = vec_ref[1:2, :]
    g2 = vec_ref[2:3, :]
    be2 = vec_ref[3:4, :]
    b3 = vec_ref[4:5, :]

    # x arrives as f32; cast to bf16 on the VPU right before the MXU.
    x = x_ref[...].astype(jnp.bfloat16)

    # ---- c_fc1 (+bias cancelled exactly by training-mode BN) + c_bn1 + c_sigmoid1 ----
    h = jnp.dot(x, w1_ref[...], preferred_element_type=jnp.float32)
    h = _batchnorm_train(h, g1, be1)
    h = 0.5 * jnp.tanh(0.5 * h) + 0.5                # sigmoid: single EUP pass

    # ---- c_fc2 (+bias cancelled by BN) + c_bn2 ----
    h = jnp.dot(h.astype(jnp.bfloat16), w2_ref[...],
                preferred_element_type=jnp.float32)
    h = _batchnorm_train(h, g2, be2)

    # ---- c_fc3 (output lane-padded to 128; pad mask folded into b3) ----
    logits = jnp.dot(h.astype(jnp.bfloat16), w3_ref[...],
                     preferred_element_type=jnp.float32) + b3

    # ---- softmax along dim=1 (stable); exact normalization on the (B,1) denom ----
    m = jnp.max(logits, axis=1, keepdims=True)
    e = jnp.exp(logits - m)
    out_ref[...] = (e / jnp.sum(e, axis=1, keepdims=True)).astype(out_ref.dtype)


def prepare_inputs(params, *, c_pad=128):
    """One-time weight prep: bf16 MXU operands, lane-padded fc3, packed vectors."""
    H = params["w1"].shape[1]
    C = params["w3"].shape[1]
    assert H == c_pad, "vector packing below assumes hidden_dim == 128"
    bf16 = jnp.bfloat16

    w1 = params["w1"].astype(bf16)
    w2 = params["w2"].astype(bf16)
    w3 = jnp.zeros((H, c_pad), bf16).at[:, :C].set(params["w3"].astype(bf16))

    # b3 lane-padded with -1e30: padded logits == 0 (zero w3 cols) + (-1e30),
    # so exp(pad - max) == 0 and pad lanes never leak into the softmax sum.
    b3 = jnp.full((c_pad,), -1e30, jnp.float32).at[:C].set(
        params["b3"].reshape(-1).astype(jnp.float32))

    vec = jnp.zeros((8, c_pad), jnp.float32)
    vec = vec.at[0].set(params["g1"].reshape(-1))
    vec = vec.at[1].set(params["be1"].reshape(-1))
    vec = vec.at[2].set(params["g2"].reshape(-1))
    vec = vec.at[3].set(params["be2"].reshape(-1))
    vec = vec.at[4].set(b3)
    return (w1, w2, w3, vec)


def classifier_forward(x, prepped, *, n_classes):
    """x: (B, D_in) float32.  prepped: output of prepare_inputs."""
    B = x.shape[0]
    w1, w2, w3, vec = prepped
    c_pad = w3.shape[1]

    vmem = pl.BlockSpec(memory_space=pltpu.MemorySpace.VMEM)
    out_padded = pl.pallas_call(
        classifier_kernel,
        out_shape=jax.ShapeDtypeStruct((B, c_pad), jnp.float32),
        in_specs=[vmem] * 5,
        out_specs=vmem,
    )(x, w1, w2, w3, vec)
    return out_padded[:, :n_classes]


def init_params(key, input_dim=32, hidden_dim=128, output_dim=4):
    ks = jax.random.split(key, 6)
    scale = 0.1
    return {
        # Linear weights stored as (in, out); PyTorch stores (out, in) — transposed here.
        "w1": scale * jax.random.normal(ks[0], (input_dim, hidden_dim), jnp.float32),
        "b1": scale * jax.random.normal(ks[1], (1, hidden_dim), jnp.float32),
        "g1": jnp.ones((1, hidden_dim), jnp.float32),    # BatchNorm1d weight init
        "be1": jnp.zeros((1, hidden_dim), jnp.float32),  # BatchNorm1d bias init
        "w2": scale * jax.random.normal(ks[2], (hidden_dim, hidden_dim), jnp.float32),
        "b2": scale * jax.random.normal(ks[3], (1, hidden_dim), jnp.float32),
        "g2": jnp.ones((1, hidden_dim), jnp.float32),
        "be2": jnp.zeros((1, hidden_dim), jnp.float32),
        "w3": scale * jax.random.normal(ks[4], (hidden_dim, output_dim), jnp.float32),
        "b3": scale * jax.random.normal(ks[5], (1, output_dim), jnp.float32),
    }


def classifier_reference(x, p):
    """Pure-JAX reference with the same bf16-operand / f32-accumulate matmuls.

    Note: fc1/fc2 biases ARE applied here — the kernel drops them because
    training-mode BN cancels them exactly; the comparison validates that.
    """
    bf16 = jnp.bfloat16

    def dot(a, w):
        return jnp.dot(a.astype(bf16), w.astype(bf16),
                       preferred_element_type=jnp.float32)

    def bn(h, g, b, eps=_EPS):
        mu = jnp.mean(h, axis=0, keepdims=True)
        var = jnp.mean((h - mu) ** 2, axis=0, keepdims=True)
        return (h - mu) / jnp.sqrt(var + eps) * g + b

    h = dot(x, p["w1"]) + p["b1"]
    h = jax.nn.sigmoid(bn(h, p["g1"], p["be1"]))
    h = dot(h, p["w2"]) + p["b2"]
    h = bn(h, p["g2"], p["be2"])
    logits = dot(h, p["w3"]) + p["b3"]
    return jax.nn.softmax(logits, axis=1)


if __name__ == "__main__":
    key = jax.random.PRNGKey(0)
    kx, kp = jax.random.split(key)

    B, D_IN, H, C = 8, 32, 128, 4          # small, lane-aligned hidden width
    x = jax.random.normal(kx, (B, D_IN), jnp.float32)
    params = init_params(kp, input_dim=D_IN, hidden_dim=H, output_dim=C)

    prepped = prepare_inputs(params)        # one-time weight prep (outside hot path)
    out = jax.block_until_ready(classifier_forward(x, prepped, n_classes=C))
    ref = classifier_reference(x, params)

    assert out.shape == (B, C)
    # Exact softmax normalization: rows sum to 1 within f32 rounding.
    assert jnp.allclose(jnp.sum(out, axis=1), 1.0, atol=1e-4)
    # bf16 MXU operands => modest tolerance vs. the f32-stat reference.
    assert jnp.allclose(out, ref, atol=5e-3, rtol=5e-3)

    print("KERNEL_OK")
</pallas_src>

<mosaic_0001>
module attributes {stable_mosaic.version = 11 : i64} {
  func.func @classifier_kernel(%arg0: memref<8x32xf32, #tpu.memory_space<vmem>>, %arg1: memref<32x128xbf16, #tpu.memory_space<vmem>>, %arg2: memref<128x128xbf16, #tpu.memory_space<vmem>>, %arg3: memref<128x128xbf16, #tpu.memory_space<vmem>>, %arg4: memref<8x128xf32, #tpu.memory_space<vmem>>, %arg5: memref<8x128xf32, #tpu.memory_space<vmem>>) attributes {dimension_semantics = [], scalar_prefetch = 0 : i64, scratch_operands = 0 : i64, tpu.core_type = #tpu.core_type<tc>} {
    %c0 = arith.constant 0 : index
    %c0_0 = arith.constant 0 : index
    %0 = vector.load %arg4[%c0, %c0_0] : memref<8x128xf32, #tpu.memory_space<vmem>>, vector<1x128xf32>
    %c1 = arith.constant 1 : index
    %c0_1 = arith.constant 0 : index
    %1 = vector.load %arg4[%c1, %c0_1] : memref<8x128xf32, #tpu.memory_space<vmem>>, vector<1x128xf32>
    %c2 = arith.constant 2 : index
    %c0_2 = arith.constant 0 : index
    %2 = vector.load %arg4[%c2, %c0_2] : memref<8x128xf32, #tpu.memory_space<vmem>>, vector<1x128xf32>
    %c3 = arith.constant 3 : index
    %c0_3 = arith.constant 0 : index
    %3 = vector.load %arg4[%c3, %c0_3] : memref<8x128xf32, #tpu.memory_space<vmem>>, vector<1x128xf32>
    %c4 = arith.constant 4 : index
    %c0_4 = arith.constant 0 : index
    %4 = vector.load %arg4[%c4, %c0_4] : memref<8x128xf32, #tpu.memory_space<vmem>>, vector<1x128xf32>
    %c0_5 = arith.constant 0 : index
    %c0_6 = arith.constant 0 : index
    %5 = vector.load %arg0[%c0_5, %c0_6] : memref<8x32xf32, #tpu.memory_space<vmem>>, vector<8x32xf32>
    %6 = arith.truncf %5 : vector<8x32xf32> to vector<8x32xbf16>
    %c0_7 = arith.constant 0 : index
    %c0_8 = arith.constant 0 : index
    %7 = vector.load %arg1[%c0_7, %c0_8] : memref<32x128xbf16, #tpu.memory_space<vmem>>, vector<32x128xbf16>
    %cst = arith.constant dense<0.000000e+00> : vector<8x128xf32>
    %8 = tpu.matmul %6, %7, %cst {dimension_numbers = #tpu.dot_dimension_numbers<[1], [0], [0], [1], [0, 0, 1, 1], [], []>} : vector<8x32xbf16>, vector<32x128xbf16>, vector<8x128xf32> -> vector<8x128xf32>
    %cst_9 = arith.constant dense<0.000000e+00> : vector<128xf32>
    %9 = vector.multi_reduction <add>, %8, %cst_9 [0] : vector<8x128xf32> to vector<128xf32>
    %10 = vector.shape_cast %9 : vector<128xf32> to vector<1x128xf32>
    %cst_10 = arith.constant 8.000000e+00 : f32
    %11 = vector.broadcast %cst_10 : f32 to vector<1x128xf32>
    %12 = arith.divf %10, %11 : vector<1x128xf32>
    %13 = arith.mulf %8, %8 : vector<8x128xf32>
    %cst_11 = arith.constant dense<0.000000e+00> : vector<128xf32>
    %14 = vector.multi_reduction <add>, %13, %cst_11 [0] : vector<8x128xf32> to vector<128xf32>
    %15 = vector.shape_cast %14 : vector<128xf32> to vector<1x128xf32>
    %cst_12 = arith.constant 8.000000e+00 : f32
    %16 = vector.broadcast %cst_12 : f32 to vector<1x128xf32>
    %17 = arith.divf %15, %16 : vector<1x128xf32>
    %18 = arith.mulf %12, %12 : vector<1x128xf32>
    %19 = arith.subf %17, %18 : vector<1x128xf32>
    %cst_13 = arith.constant 9.99999974E-6 : f32
    %20 = vector.broadcast %cst_13 : f32 to vector<1x128xf32>
    %21 = arith.addf %19, %20 : vector<1x128xf32>
    %22 = math.rsqrt %21 : vector<1x128xf32>
    %23 = arith.mulf %0, %22 : vector<1x128xf32>
    %24 = arith.mulf %12, %23 : vector<1x128xf32>
    %25 = arith.subf %1, %24 : vector<1x128xf32>
    %26 = vector.broadcast %23 : vector<1x128xf32> to vector<8x128xf32>
    %27 = arith.mulf %8, %26 : vector<8x128xf32>
    %28 = vector.broadcast %25 : vector<1x128xf32> to vector<8x128xf32>
    %29 = arith.addf %27, %28 : vector<8x128xf32>
    %cst_14 = arith.constant 5.000000e-01 : f32
    %30 = vector.broadcast %cst_14 : f32 to vector<8x128xf32>
    %31 = arith.mulf %30, %29 : vector<8x128xf32>
    %32 = math.tanh %31 : vector<8x128xf32>
    %cst_15 = arith.constant 5.000000e-01 : f32
    %33 = vector.broadcast %cst_15 : f32 to vector<8x128xf32>
    %34 = arith.mulf %33, %32 : vector<8x128xf32>
    %cst_16 = arith.constant 5.000000e-01 : f32
    %35 = vector.broadcast %cst_16 : f32 to vector<8x128xf32>
    %36 = arith.addf %34, %35 : vector<8x128xf32>
    %37 = arith.truncf %36 : vector<8x128xf32> to vector<8x128xbf16>
    %c0_17 = arith.constant 0 : index
    %c0_18 = arith.constant 0 : index
    %38 = vector.load %arg2[%c0_17, %c0_18] : memref<128x128xbf16, #tpu.memory_space<vmem>>, vector<128x128xbf16>
    %cst_19 = arith.constant dense<0.000000e+00> : vector<8x128xf32>
    %39 = tpu.matmul %37, %38, %cst_19 {dimension_numbers = #tpu.dot_dimension_numbers<[1], [0], [0], [1], [0, 0, 1, 1], [], []>} : vector<8x128xbf16>, vector<128x128xbf16>, vector<8x128xf32> -> vector<8x128xf32>
    %cst_20 = arith.constant dense<0.000000e+00> : vector<128xf32>
    %40 = vector.multi_reduction <add>, %39, %cst_20 [0] : vector<8x128xf32> to vector<128xf32>
    %41 = vector.shape_cast %40 : vector<128xf32> to vector<1x128xf32>
    %cst_21 = arith.constant 8.000000e+00 : f32
    %42 = vector.broadcast %cst_21 : f32 to vector<1x128xf32>
    %43 = arith.divf %41, %42 : vector<1x128xf32>
    %44 = arith.mulf %39, %39 : vector<8x128xf32>
    %cst_22 = arith.constant dense<0.000000e+00> : vector<128xf32>
    %45 = vector.multi_reduction <add>, %44, %cst_22 [0] : vector<8x128xf32> to vector<128xf32>
    %46 = vector.shape_cast %45 : vector<128xf32> to vector<1x128xf32>
    %cst_23 = arith.constant 8.000000e+00 : f32
    %47 = vector.broadcast %cst_23 : f32 to vector<1x128xf32>
    %48 = arith.divf %46, %47 : vector<1x128xf32>
    %49 = arith.mulf %43, %43 : vector<1x128xf32>
    %50 = arith.subf %48, %49 : vector<1x128xf32>
    %cst_24 = arith.constant 9.99999974E-6 : f32
    %51 = vector.broadcast %cst_24 : f32 to vector<1x128xf32>
    %52 = arith.addf %50, %51 : vector<1x128xf32>
    %53 = math.rsqrt %52 : vector<1x128xf32>
    %54 = arith.mulf %2, %53 : vector<1x128xf32>
    %55 = arith.mulf %43, %54 : vector<1x128xf32>
    %56 = arith.subf %3, %55 : vector<1x128xf32>
    %57 = vector.broadcast %54 : vector<1x128xf32> to vector<8x128xf32>
    %58 = arith.mulf %39, %57 : vector<8x128xf32>
    %59 = vector.broadcast %56 : vector<1x128xf32> to vector<8x128xf32>
    %60 = arith.addf %58, %59 : vector<8x128xf32>
    %61 = arith.truncf %60 : vector<8x128xf32> to vector<8x128xbf16>
    %c0_25 = arith.constant 0 : index
    %c0_26 = arith.constant 0 : index
    %62 = vector.load %arg3[%c0_25, %c0_26] : memref<128x128xbf16, #tpu.memory_space<vmem>>, vector<128x128xbf16>
    %cst_27 = arith.constant dense<0.000000e+00> : vector<8x128xf32>
    %63 = tpu.matmul %61, %62, %cst_27 {dimension_numbers = #tpu.dot_dimension_numbers<[1], [0], [0], [1], [0, 0, 1, 1], [], []>} : vector<8x128xbf16>, vector<128x128xbf16>, vector<8x128xf32> -> vector<8x128xf32>
    %64 = vector.broadcast %4 : vector<1x128xf32> to vector<8x128xf32>
    %65 = arith.addf %63, %64 : vector<8x128xf32>
    %cst_28 = arith.constant dense<0xFF800000> : vector<8xf32>
    %66 = vector.multi_reduction <maximumf>, %65, %cst_28 [1] : vector<8x128xf32> to vector<8xf32>
    %67 = vector.shape_cast %66 : vector<8xf32> to vector<8x1xf32>
    %68 = vector.broadcast %67 : vector<8x1xf32> to vector<8x128xf32>
    %69 = arith.subf %65, %68 : vector<8x128xf32>
    %70 = math.exp %69 : vector<8x128xf32>
    %cst_29 = arith.constant dense<0.000000e+00> : vector<8xf32>
    %71 = vector.multi_reduction <add>, %70, %cst_29 [1] : vector<8x128xf32> to vector<8xf32>
    %72 = vector.shape_cast %71 : vector<8xf32> to vector<8x1xf32>
    %73 = vector.broadcast %72 : vector<8x1xf32> to vector<8x128xf32>
    %74 = arith.divf %70, %73 : vector<8x128xf32>
    %c0_30 = arith.constant 0 : index
    %c0_31 = arith.constant 0 : index
    %75 = vector.load %arg5[%c0_30, %c0_31] : memref<8x128xf32, #tpu.memory_space<vmem>>, vector<8x128xf32>
    tpu.vector_store %arg5[%c0_30, %c0_31], %74 {strides = array<i32>} : memref<8x128xf32, #tpu.memory_space<vmem>>, vector<8x128xf32>,
    return
  }
}

</mosaic_0001>

<bundles_post_ra>
// kernel: tpu_custom_call.1
= control target key start
LH: loop header
LB: loop body
LE: loop exit
PB: predicated region body
PF: predicated region fallthrough
CT: control target
= control target key end

     0   :  { %10 = vsyncpa [#allocation3], 0  ;;  %s812_s0 = inlined_call_operand.hbm [shape: f32[8,32], index: 0, kind: input, shape index: {}]   ;;  %s813_s1 = inlined_call_operand.hbm [shape: bf16[32,128], index: 1, kind: input, shape index: {}]   ;;  %s814_s2 = inlined_call_operand.hbm [shape: bf16[128,128], index: 2, kind: input, shape index: {}]   ;;  %s815_s3 = inlined_call_operand.hbm [shape: bf16[128,128], index: 3, kind: input, shape index: {}]   ;;  %s816_s4 = inlined_call_operand.hbm [shape: f32[8,128], index: 4, kind: input, shape index: {}]   ;;  %s817_s5 = inlined_call_operand.hbm [shape: f32[8,128], index: 5, kind: output, shape index: {}]  }
   0x1   :  { %11 = vsyncpa [#allocation6], 0 }
   0x2   :  { %12 = vsyncpa [#allocation9], 0 }
   0x3   :  { %13 = vsyncpa [#allocation4], 0  ;;  %s718_s18 = smov [#allocation5]  }
   0x4   :  { %s29_s19 = sshll.u32 %s718_s18, 4  ;;  %s30_s19 = int_to_ptr.vmem [resolvable:$true] %s29_s19 }
   0x5   :  { %s598_s20 = scalar_lea.vmem %s30_s19, 256  ;;  %p603_p1 = scmp.lt.s32.totalorder %s30_s19, %s30_s19 }
   0x6   :  { %p599_p0 = scmp.ne.s32.totalorder %s30_s19, %s598_s20  ;;  %p604_p2 = scmp.lt.s32.totalorder %s598_s20, %s598_s20 }
   0x8   :  { %p605_p3 = por %p604_p2, %p603_p1 }
   0xa   :  { %p606_p4 = pnand %p605_p3, %p599_p0 }
   0xc   :  { %609 = shalt.err (!%p606_p4)
}
   0xd   :  { %s719_s21 = smov 64   ;;  %s720_s22 = smov 4  }
   0xe   :  { %35 = dma.hbm_to_vmem [thread:$0]  %s813_s1, 256, %s30_s19, [#allocation6], %s719_s21, %s719_s21, %s720_s22  }
   0xf   :  { %s721_s25 = smov [#allocation8]   ;;  %s722_s27 = smov [#allocation2]  }
  0x10   :  { %s53_s26 = sshll.u32 %s721_s25, 4  ;;  %s20_s28 = sshll.u32 %s722_s27, 4  ;;  %s54_s26 = int_to_ptr.vmem [resolvable:$true] %s53_s26  ;;  %s21_s28 = int_to_ptr.vmem [resolvable:$true] %s20_s28 }
  0x11   :  { %s618_s29 = scalar_lea.vmem %s54_s26, 1024  ;;  %p623_p6 = scmp.lt.s32.totalorder %s54_s26, %s54_s26 }
  0x12   :  { %p619_p5 = scmp.ne.s32.totalorder %s54_s26, %s618_s29  ;;  %p624_p7 = scmp.lt.s32.totalorder %s618_s29, %s618_s29 }
  0x14   :  { %p625_p8 = por %p624_p7, %p623_p6 }
  0x16   :  { %p626_p9 = pnand %p625_p8, %p619_p5 }
  0x18   :  { %629 = shalt.err (!%p626_p9)
}
  0x19   :  { %59 = dma.hbm_to_vmem [thread:$0]  %s815_s3, 1024, %s54_s26, [#allocation9], %s719_s21, %s719_s21, %s720_s22  }
  0x1a   :  { %s638_s1 = scalar_lea.vmem %s21_s28, 128  ;;  %p643_p11 = scmp.lt.s32.totalorder %s21_s28, %s21_s28 }
  0x1b   :  { %p639_p10 = scmp.ne.s32.totalorder %s21_s28, %s638_s1  ;;  %p644_p12 = scmp.lt.s32.totalorder %s638_s1, %s638_s1 }
  0x1d   :  { %p645_p13 = por %p644_p12, %p643_p11 }
  0x1f   :  { %p646_p0 = pnand %p645_p13, %p639_p10 }
  0x21   :  { %649 = shalt.err (!%p646_p0)
}
  0x22   :  { %23 = dma.hbm_to_vmem [thread:$0]  %s812_s0, 128, %s21_s28, [#allocation3]  }
  0x23   :  { %s723_s9 = smov [#allocation7]   ;;  %s724_s11 = smov [#allocation10]  }
  0x24   :  { %s41_s10 = sshll.u32 %s723_s9, 4  ;;  %s66_s12 = sshll.u32 %s724_s11, 4  ;;  %s42_s10 = int_to_ptr.vmem [resolvable:$true] %s41_s10  ;;  %s67_s12 = int_to_ptr.vmem [resolvable:$true] %s66_s12 }
  0x25   :  { %s658_s13 = scalar_lea.vmem %s42_s10, 1024  ;;  %p663_p2 = scmp.lt.s32.totalorder %s42_s10, %s42_s10 }
  0x26   :  { %p659_p1 = scmp.ne.s32.totalorder %s42_s10, %s658_s13  ;;  %p664_p3 = scmp.lt.s32.totalorder %s658_s13, %s658_s13 }
  0x28   :  { %p665_p4 = por %p664_p3, %p663_p2 }
  0x2a   :  { %p666_p5 = pnand %p665_p4, %p659_p1 }
  0x2c   :  { %669 = shalt.err (!%p666_p5)
}
  0x2d   :  { %47 = dma.hbm_to_vmem [thread:$0]  %s814_s2, 1024, %s42_s10, [#allocation6], %s719_s21, %s719_s21, %s720_s22  }
  0x2e   :  { %s678_s0 = scalar_lea.vmem %s67_s12, 128  ;;  %p683_p7 = scmp.lt.s32.totalorder %s67_s12, %s67_s12 }
  0x2f   :  { %p679_p6 = scmp.ne.s32.totalorder %s67_s12, %s678_s0  ;;  %p684_p8 = scmp.lt.s32.totalorder %s678_s0, %s678_s0 }
  0x31   :  { %p685_p9 = por %p684_p8, %p683_p7 }
  0x33   :  { %p686_p10 = pnand %p685_p9, %p679_p6 }
  0x35   :  { %689 = shalt.err (!%p686_p10)
}
  0x36   :  { %69 = dma.hbm_to_vmem [thread:$0]  %s816_s4, 128, %s67_s12, [#allocation9]  }
  0x37   :  { %710 = dma.done.wait [#allocation3], 128  }
  0x38   :  { %711 = vsyncadd [#allocation3], 4294967168 }
  0x39   :  { %712 = dma.done.wait [#allocation6], 1280  }
  0x3a   :  { %713 = vsyncadd [#allocation6], 4294966016 }
  0x3b   :  { %714 = dma.done.wait [#allocation9], 1152  }
  0x3c   :  { %715 = vsyncadd [#allocation9], 4294966144  ;;  %v725_v0 = vmov 0.0   ;;  %vm726_vm0 = vmmov 0   ;;  %v562_v1 = vld [vmem:[#allocation5 + $0x8] sm:$0xff]   ;;  %v563_v2 = vld [vmem:[#allocation5] sm:$0xff]   ;;  %v176_v35 = vlaneseq }
  0x3d   :  { %504 = vmatprep.subr.bf16.mxu0 %v725_v0  ;;  %508 = vmatprep.mubr.msk.bf16.mxu0 %vm726_vm0, %v725_v0  ;;  %v91_v3 = vld [vmem:[#allocation2] sm:$0xff]  ;;  %vm109_vm1 = vcmask 261120   ;;  %v564_v5 = vld [vmem:[#allocation7 + $0x38] sm:$0xff]   ;;  %v565_v6 = vld [vmem:[#allocation7 + $0x30] sm:$0xff]   ;;  %s727_s2 = smov [#allocation11]  }
  0x3e   :  { %512 = vmatprep.subr.bf16.mxu1 %v725_v0  ;;  %528 = vmatprep.mubr.msk.bf16.mxu1 %vm726_vm0, %v725_v0  ;;  %v92_v4 = vpack.c.bf16 %v91_v3, %v91_v3  ;;  %v566_v7 = vld [vmem:[#allocation7 + $0x28] sm:$0xff]   ;;  %v567_v8 = vld [vmem:[#allocation7 + $0x20] sm:$0xff]   ;;  %v568_v9 = vld [vmem:[#allocation7 + $0x18] sm:$0xff]   ;;  %v177_v36 = vshrl.u32 %v176_v35, 7  ;;  %s452_s4 = sshll.u32 %s727_s2, 4  ;;  %s453_s4 = int_to_ptr.vmem [resolvable:$true] %s452_s4 }
  0x3f   :  { %505 = vmatpush3.bf16.msra.mxu0 %v562_v1  ;;  %513 = vmatpush3.bf16.msra.mxu1 %v564_v5  ;;  %v569_v10 = vld [vmem:[#allocation7 + $0x10] sm:$0xff]   ;;  %v570_v11 = vld [vmem:[#allocation7 + $0x8] sm:$0xff]   ;;  %v571_v12 = vld [vmem:[#allocation7] sm:$0xff]   ;;  %s690_s17 = scalar_lea.vmem %s453_s4, 128  ;;  %p695_p12 = scmp.lt.s32.totalorder %s453_s4, %s453_s4 }
  0x40   :  { %506 = vmatprep.subr.bf16.mxu0 %v725_v0  ;;  %514 = vmatprep.subr.bf16.mxu1 %v725_v0  ;;  %v86_v37 = vld [vmem:[#allocation10] sm:$0x1]  ;;  %v796_v38 = vsub.s32 0, %v177_v36  ;;  %v87_v41 = vld [vmem:[#allocation10 + $0x1] sm:$0x1]  ;;  %v572_v53 = vld [vmem:[#allocation8 + $0x38] sm:$0xff]   ;;  %p691_p11 = scmp.ne.s32.totalorder %s453_s4, %s690_s17  ;;  %p696_p13 = scmp.lt.s32.totalorder %s690_s17, %s690_s17 }
  0x41   :  { %v573_v54 = vld [vmem:[#allocation8 + $0x30] sm:$0xff]   ;;  %v574_v55 = vld [vmem:[#allocation8 + $0x28] sm:$0xff]   ;;  %v575_v56 = vld [vmem:[#allocation8 + $0x20] sm:$0xff]  }
  0x42   :  { %v576_v57 = vld [vmem:[#allocation8 + $0x18] sm:$0xff]   ;;  %v577_v58 = vld [vmem:[#allocation8 + $0x10] sm:$0xff]   ;;  %v578_v59 = vld [vmem:[#allocation8 + $0x8] sm:$0xff]   ;;  %p697_p0 = por %p696_p13, %p695_p12 }
  0x43   :  { %507 = vmatpush3.bf16.msra.mxu0 %v563_v2  ;;  %515 = vmatpush3.bf16.msra.mxu1 %v565_v6  ;;  %v579_v60 = vld [vmem:[#allocation8] sm:$0xff]  }
  0x44   :  { %532 = vmatprep.subr.bf16.mxu0 %v725_v0  ;;  %516 = vmatprep.subr.bf16.mxu1 %v725_v0  ;;  %p698_p1 = pnand %p697_p0, %p691_p11 }
  0x46   :  { %509 = vmatmul.mubr.msk.bf16.vlgmr.msra.gmra.mxu0 %vm109_vm1, %v92_v4 }
  0x47   :  { %548 = vmatprep.mubr.msk.bf16.mxu0 %vm726_vm0, %v725_v0  ;;  %517 = vmatpush3.bf16.msra.mxu1 %v566_v7 }
  0x48   :  { %518 = vmatprep.subr.bf16.mxu1 %v725_v0  ;;  %533 = vmatpush3.bf16.msra.mxu0 %v572_v53 }
  0x49   :  { %534 = vmatprep.subr.bf16.mxu0 %v725_v0 }
  0x4b   :  { %519 = vmatpush3.bf16.msra.mxu1 %v567_v8 }
  0x4c   :  { %520 = vmatprep.subr.bf16.mxu1 %v725_v0  ;;  %535 = vmatpush3.bf16.msra.mxu0 %v573_v54 }
  0x4d   :  { %536 = vmatprep.subr.bf16.mxu0 %v725_v0 }
  0x4f   :  { %521 = vmatpush3.bf16.msra.mxu1 %v568_v9 }
  0x50   :  { %522 = vmatprep.subr.bf16.mxu1 %v725_v0  ;;  %537 = vmatpush3.bf16.msra.mxu0 %v574_v55 }
  0x51   :  { %538 = vmatprep.subr.bf16.mxu0 %v725_v0 }
  0x53   :  { %523 = vmatpush3.bf16.msra.mxu1 %v569_v10 }
  0x54   :  { %524 = vmatprep.subr.bf16.mxu1 %v725_v0  ;;  %539 = vmatpush3.bf16.msra.mxu0 %v575_v56 }
  0x55   :  { %540 = vmatprep.subr.bf16.mxu0 %v725_v0 }
  0x57   :  { %525 = vmatpush3.bf16.msra.mxu1 %v570_v11 }
  0x58   :  { %526 = vmatprep.subr.bf16.mxu1 %v725_v0  ;;  %541 = vmatpush3.bf16.msra.mxu0 %v576_v57 }
  0x59   :  { %542 = vmatprep.subr.bf16.mxu0 %v725_v0 }
  0x5b   :  { %527 = vmatpush3.bf16.msra.mxu1 %v571_v12 }
  0x5c   :  { %543 = vmatpush3.bf16.msra.mxu0 %v577_v58 }
  0x5d   :  { %544 = vmatprep.subr.bf16.mxu0 %v725_v0 }
  0x60   :  { %545 = vmatpush3.bf16.msra.mxu0 %v578_v59 }
  0x61   :  { %546 = vmatprep.subr.bf16.mxu0 %v725_v0 }
  0x64   :  { %547 = vmatpush3.bf16.msra.mxu0 %v579_v60 }
 0x106   :  { %v147_v13 = vpop.f32.mrf.mxu0 }
 0x107   :  { %v153_v14 = vrot.slane %v147_v13, 4  ;;  %v161_v15 = vmul.f32 %v147_v13, %v147_v13 }
 0x108   :  { %v510_v16 = vpop.f32.mrf.mxu0 }
 0x109   :  { %v154_v17 = vadd.f32 %v153_v14, %v147_v13  ;;  %v162_v18 = vrot.slane %v161_v15, 4 }
 0x10a   :  { %v150_v19 = vpop.f32.mrf.mxu0 }
 0x10b   :  { %v155_v20 = vrot.slane %v154_v17, 2  ;;  %v163_v21 = vadd.f32 %v162_v18, %v161_v15  ;;  %v88_v19 = vld [vmem:[#allocation10 + $0x2] sm:$0x1] }
 0x10c   :  { %v511_v22 = vpop.f32.mrf.mxu0 }
 0x10d   :  { %v156_v23 = vadd.f32 %v155_v20, %v154_v17  ;;  %v164_v24 = vrot.slane %v163_v21, 2  ;;  %v89_v22 = vld [vmem:[#allocation10 + $0x3] sm:$0x1] }
 0x10f   :  { %v157_v25 = vrot.slane %v156_v23, 1  ;;  %v165_v26 = vadd.f32 %v164_v24, %v163_v21 }
 0x111   :  { %v158_v27 = vadd.f32 %v157_v25, %v156_v23  ;;  %v166_v28 = vrot.slane %v165_v26, 1 }
 0x113   :  { %v160_v29 = vmul.f32 0.125, %v158_v27  ;;  %v167_v30 = vadd.f32 %v166_v28, %v165_v26 }
 0x115   :  { %v168_v31 = vmul.f32 0.125, %v167_v30  ;;  %v169_v32 = vmul.f32 %v160_v29, %v160_v29  ;;  %v474_v30 = vld [vmem:[#allocation10 + $0x4] ss:$0 sm:$0xff] }
 0x117   :  { %v170_v33 = vsub.f32 %v168_v31, %v169_v32 }
 0x119   :  { %v171_v34 = vadd.f32 1e-05, %v170_v33 }
 0x11b   :  { %580 = vrsqrt.f32 %v171_v34 }
 0x128   :  { %v581_v39 = vpop.eup %580 }
 0x129   :  { %v173_v40 = vmul.f32 %v581_v39, %v86_v37 }
 0x12b   :  { %v174_v42 = vmul.f32 %v173_v40, %v160_v29  ;;  %v179_v43 = vrot.slane %v173_v40, %v796_v38 }
 0x12d   :  { %v175_v44 = vsub.f32 %v87_v41, %v174_v42  ;;  %v180_v45 = vmul.f32 %v179_v43, %v147_v13 }
 0x12f   :  { %v184_v46 = vrot.slane %v175_v44, %v796_v38 }
 0x131   :  { %v185_v47 = vadd.f32 %v184_v46, %v180_v45 }
 0x133   :  { %v186_v48 = vmul.f32 0.5, %v185_v47 }
 0x135   :  { %582 = vtanh.f32 %v186_v48 }
 0x142   :  { %v583_v49 = vpop.eup %582 }
 0x143   :  { %v188_v50 = vmul.f32 0.5, %v583_v49 }
 0x145   :  { %v189_v51 = vadd.f32 0.5, %v188_v50 }
 0x147   :  { %v190_v52 = vpack.c.bf16 %v189_v51, %v189_v51 }
 0x149   :  { %529 = vmatmul.mubr.bf16.vlgmr.msra.gmra.mxu1 %v190_v52 }
 0x209   :  { %v289_v61 = vpop.f32.mrf.mxu1 }
 0x20a   :  { %v295_v62 = vrot.slane %v289_v61, 4  ;;  %v302_v63 = vmul.f32 %v289_v61, %v289_v61 }
 0x20b   :  { %v530_v1 = vpop.f32.mrf.mxu1 }
 0x20c   :  { %v296_v2 = vadd.f32 %v295_v62, %v289_v61  ;;  %v303_v3 = vrot.slane %v302_v63, 4 }
 0x20d   :  { %v292_v4 = vpop.f32.mrf.mxu1 }
 0x20e   :  { %v297_v5 = vrot.slane %v296_v2, 2  ;;  %v304_v6 = vadd.f32 %v303_v3, %v302_v63 }
 0x20f   :  { %v531_v7 = vpop.f32.mrf.mxu1 }
 0x210   :  { %v298_v8 = vadd.f32 %v297_v5, %v296_v2  ;;  %v305_v9 = vrot.slane %v304_v6, 2 }
 0x212   :  { %v299_v10 = vrot.slane %v298_v8, 1  ;;  %v306_v11 = vadd.f32 %v305_v9, %v304_v6 }
 0x214   :  { %v300_v12 = vadd.f32 %v299_v10, %v298_v8  ;;  %v307_v13 = vrot.slane %v306_v11, 1 }
 0x216   :  { %v301_v14 = vmul.f32 0.125, %v300_v12  ;;  %v308_v0 = vadd.f32 %v307_v13, %v306_v11 }
 0x218   :  { %v309_v15 = vmul.f32 0.125, %v308_v0  ;;  %v310_v16 = vmul.f32 %v301_v14, %v301_v14 }
 0x21a   :  { %v311_v17 = vsub.f32 %v309_v15, %v310_v16 }
 0x21c   :  { %v312_v18 = vadd.f32 1e-05, %v311_v17 }
 0x21e   :  { %584 = vrsqrt.f32 %v312_v18 }
 0x22b   :  { %v585_v20 = vpop.eup %584 }
 0x22c   :  { %v314_v21 = vmul.f32 %v585_v20, %v88_v19 }
 0x22e   :  { %v315_v23 = vmul.f32 %v314_v21, %v301_v14  ;;  %v320_v24 = vrot.slane %v314_v21, %v796_v38 }
 0x230   :  { %v316_v25 = vsub.f32 %v89_v22, %v315_v23  ;;  %v321_v26 = vmul.f32 %v320_v24, %v289_v61 }
 0x232   :  { %v325_v27 = vrot.slane %v316_v25, %v796_v38 }
 0x234   :  { %v326_v28 = vadd.f32 %v325_v27, %v321_v26 }
 0x236   :  { %v327_v29 = vpack.c.bf16 %v326_v28, %v326_v28 }
 0x238   :  { %549 = vmatmul.mubr.bf16.vlgmr.msra.gmra.mxu0 %v327_v29 }
 0x2f8   :  { %v430_v31 = vpop.f32.mrf.mxu0 }
 0x2f9   :  { %v431_v32 = vadd.f32 %v474_v30, %v430_v31 }
 0x2fa   :  { %v550_v33 = vpop.f32.mrf.mxu0 }
 0x2fb   :  { %436 = vmax.xlane.f32.xlu0 %v431_v32 }
 0x2fc   :  { %v433_v34 = vpop.f32.mrf.mxu0 }
 0x2fe   :  { %v551_v35 = vpop.f32.mrf.mxu0 }
 0x384   :  { %v437_v36 = vpop.xlane.xlu0 %436 }
 0x385   :  { %v438_v37 = vsub.f32 %v431_v32, %v437_v36 }
 0x387   :  { %v439_v39 = vmul.f32 1.442695, %v438_v37 }
 0x389   :  { %586 = vpow2.f32 %v439_v39 }
 0x396   :  { %v587_v40 = vpop.eup %586 }
 0x397   :  { %441 = vadd.xlane.f32.xlu0 %v587_v40 }
 0x420   :  { %v442_v41 = vpop.xlane.xlu0 %441 }
 0x421   :  { %588 = vrcp.f32 %v442_v41 }
 0x42e   :  { %v589_v38 = vpop.eup %588 }
 0x42f   :  { %v444_v42 = vmul.f32 %v589_v38, %v587_v40 }
 0x431   :  { %445 = vst [vmem:[#allocation11] sm:$0xff] %v444_v42 }
 0x432   :  { %701 = shalt.err (!%p698_p1)
}
 0x433   :  { %455 = dma.vmem_to_hbm [thread:$0]  %s453_s4, 128, %s817_s5, [#allocation4]  }
 0x434   :  { %716 = dma.done.wait [#allocation4], 128  }
 0x435   :  { %717 = vsyncadd [#allocation4], 4294967168 }
 0x436   :  { %459 = vsyncpa [#allocation3], 1 }
 0x437   :  { %460 = vsyncpa [#allocation6], 1 }
 0x438   :  { %461 = vsyncpa [#allocation9], 1 }
 0x439   :  { %462 = vsyncpa [#allocation4], 1 }

</bundles_post_ra>
